<compile_context>
chip_gen: v7x
topology: tpu7x:2x2x1
jax: 0.10.0
libtpu: 0.0.40
codegen_flags: <defaults>
</compile_context>

<pallas_src>
import functools
import math

import jax
import jax.numpy as jnp
from jax import lax
from jax.experimental import pallas as pl
from jax.experimental.pallas import tpu as pltpu

# Make the pure-JAX reference use true f32 matmuls so the correctness check
# compares like-for-like with the f32-accumulating Pallas kernels.
jax.config.update("jax_default_matmul_precision", "highest")

MAX_FRAMES = 30
LN_EPS = 1e-5


# ---------------------------------------------------------------------------
# Positional-encoding buffer (matches torch PositionalEncoding.__init__).
# ---------------------------------------------------------------------------
def _build_pe(d_model: int, max_len: int) -> jnp.ndarray:
    position = jnp.arange(max_len, dtype=jnp.float32)[:, None]            # (L, 1)
    div_term = jnp.exp(jnp.arange(0, d_model, 2, dtype=jnp.float32)
                       * (-math.log(10000.0) / d_model))                  # (D/2,)
    pe = jnp.zeros((max_len, d_model), dtype=jnp.float32)
    pe = pe.at[:, 0::2].set(jnp.sin(position * div_term))
    pe = pe.at[:, 1::2].set(jnp.cos(position * div_term))
    return pe


# ---------------------------------------------------------------------------
# Kernel 1: fused src_proj (Linear) + positional-encoding add.
# ---------------------------------------------------------------------------
def _src_proj_pe_kernel(x_ref, w_ref, b_ref, pe_ref, o_ref):
    x = x_ref[...].astype(jnp.float32)                                    # (S, In)
    y = jnp.dot(x, w_ref[...].astype(jnp.float32),
                preferred_element_type=jnp.float32)                       # (S, D)
    y = y + b_ref[...].astype(jnp.float32)                                # (1, D)
    y = y + pe_ref[...].astype(jnp.float32)                               # (S, D)
    o_ref[...] = y.astype(o_ref.dtype)


def src_proj_with_pe(src, w, b, pe_s):
    B, S, In = src.shape
    D = w.shape[1]
    return pl.pallas_call(
        _src_proj_pe_kernel,
        out_shape=jax.ShapeDtypeStruct((B, S, D), src.dtype),
        grid=(B,),
        in_specs=[
            pl.BlockSpec((None, S, In), lambda i: (i, 0, 0)),   # per-batch tile
            pl.BlockSpec((In, D), lambda i: (0, 0)),            # weight: resident
            pl.BlockSpec((1, D), lambda i: (0, 0)),             # bias: resident
            pl.BlockSpec((S, D), lambda i: (0, 0)),             # pe: resident
        ],
        out_specs=pl.BlockSpec((None, S, D), lambda i: (i, 0, 0)),
        compiler_params=pltpu.CompilerParams(dimension_semantics=("parallel",)),
    )(src, w, b.reshape(1, D), pe_s)


# ---------------------------------------------------------------------------
# Kernel 2: generic fused Linear (+ optional ReLU), row-tiled for large M.
# ---------------------------------------------------------------------------
def _linear_kernel(x_ref, w_ref, b_ref, o_ref, *, activation):
    x = x_ref[...].astype(jnp.float32)
    y = jnp.dot(x, w_ref[...].astype(jnp.float32),
                preferred_element_type=jnp.float32)
    y = y + b_ref[...].astype(jnp.float32)
    if activation == "relu":
        y = jnp.maximum(y, 0.0)
    o_ref[...] = y.astype(o_ref.dtype)


def linear(x2d, w, b, activation="none", row_tile=256):
    M, K = x2d.shape
    N = w.shape[1]
    # Small-input fast path: single full block; large inputs: 256-row tiles
    # (multiple of 8) with Pallas handling the ragged tail.
    tm = M if M <= 2 * row_tile else row_tile
    return pl.pallas_call(
        functools.partial(_linear_kernel, activation=activation),
        out_shape=jax.ShapeDtypeStruct((M, N), x2d.dtype),
        grid=(pl.cdiv(M, tm),),
        in_specs=[
            pl.BlockSpec((tm, K), lambda i: (i, 0)),
            pl.BlockSpec((K, N), lambda i: (0, 0)),             # weight resident
            pl.BlockSpec((1, N), lambda i: (0, 0)),             # bias resident
        ],
        out_specs=pl.BlockSpec((tm, N), lambda i: (i, 0)),
        compiler_params=pltpu.CompilerParams(dimension_semantics=("parallel",)),
    )(x2d, w, b.reshape(1, N))


# ---------------------------------------------------------------------------
# Kernel 3: scaled dot-product attention, one (batch, head) tile per step.
# ---------------------------------------------------------------------------
def _attention_kernel(q_ref, k_ref, v_ref, o_ref, *, scale):
    q = q_ref[...].astype(jnp.float32)                                    # (Sq, dk)
    k = k_ref[...].astype(jnp.float32)                                    # (Sk, dk)
    v = v_ref[...].astype(jnp.float32)                                    # (Sk, dv)
    s = lax.dot_general(q, k, (((1,), (1,)), ((), ())),
                        preferred_element_type=jnp.float32) * scale       # (Sq, Sk)
    m = jnp.max(s, axis=-1, keepdims=True)
    p = jnp.exp(s - m)
    attn = p / jnp.sum(p, axis=-1, keepdims=True)
    o = jnp.dot(attn, v, preferred_element_type=jnp.float32)              # (Sq, dv)
    o_ref[...] = o.astype(o_ref.dtype)


def scaled_dot_attention(q, k, v, d_k):
    B, H, Sq, dk = q.shape
    Sk, dv = k.shape[2], v.shape[3]
    return pl.pallas_call(
        functools.partial(_attention_kernel, scale=1.0 / math.sqrt(d_k)),
        out_shape=jax.ShapeDtypeStruct((B, H, Sq, dv), q.dtype),
        grid=(B, H),
        in_specs=[
            pl.BlockSpec((None, None, Sq, dk), lambda b, h: (b, h, 0, 0)),
            pl.BlockSpec((None, None, Sk, dk), lambda b, h: (b, h, 0, 0)),
            pl.BlockSpec((None, None, Sk, dv), lambda b, h: (b, h, 0, 0)),
        ],
        out_specs=pl.BlockSpec((None, None, Sq, dv), lambda b, h: (b, h, 0, 0)),
        compiler_params=pltpu.CompilerParams(
            dimension_semantics=("parallel", "parallel")),
    )(q, k, v)


# ---------------------------------------------------------------------------
# Kernel 4: fused residual add + LayerNorm (AddNormalization).
# ---------------------------------------------------------------------------
def _add_layernorm_kernel(x_ref, y_ref, g_ref, b_ref, o_ref, *, eps):
    z = x_ref[...].astype(jnp.float32) + y_ref[...].astype(jnp.float32)   # (tm, D)
    mu = jnp.mean(z, axis=-1, keepdims=True)
    zc = z - mu
    var = jnp.mean(zc * zc, axis=-1, keepdims=True)
    zn = zc * lax.rsqrt(var + eps)
    o_ref[...] = (zn * g_ref[...].astype(jnp.float32)
                  + b_ref[...].astype(jnp.float32)).astype(o_ref.dtype)


def add_layernorm(x, sub, gamma, beta, row_tile=256):
    B, S, D = x.shape
    M = B * S
    tm = M if M <= 2 * row_tile else row_tile
    out = pl.pallas_call(
        functools.partial(_add_layernorm_kernel, eps=LN_EPS),
        out_shape=jax.ShapeDtypeStruct((M, D), x.dtype),
        grid=(pl.cdiv(M, tm),),
        in_specs=[
            pl.BlockSpec((tm, D), lambda i: (i, 0)),
            pl.BlockSpec((tm, D), lambda i: (i, 0)),
            pl.BlockSpec((1, D), lambda i: (0, 0)),
            pl.BlockSpec((1, D), lambda i: (0, 0)),
        ],
        out_specs=pl.BlockSpec((tm, D), lambda i: (i, 0)),
        compiler_params=pltpu.CompilerParams(dimension_semantics=("parallel",)),
    )(x.reshape(M, D), sub.reshape(M, D),
      gamma.reshape(1, D), beta.reshape(1, D))
    return out.reshape(B, S, D)


# ---------------------------------------------------------------------------
# Kernel 5: fused mean-pool over sequence + classifier Linear.
# ---------------------------------------------------------------------------
def _pool_classify_kernel(x_ref, w_ref, b_ref, o_ref, *, inv_s):
    x = x_ref[...].astype(jnp.float32)                                    # (S, D)
    pooled = jnp.sum(x, axis=0, keepdims=True) * inv_s                    # (1, D)
    y = jnp.dot(pooled, w_ref[...].astype(jnp.float32),
                preferred_element_type=jnp.float32)
    o_ref[...] = (y + b_ref[...].astype(jnp.float32)).astype(o_ref.dtype)


def pool_and_classify(x, w, b):
    B, S, D = x.shape
    C = w.shape[1]
    out = pl.pallas_call(
        functools.partial(_pool_classify_kernel, inv_s=1.0 / S),
        out_shape=jax.ShapeDtypeStruct((B, 1, C), x.dtype),
        grid=(B,),
        in_specs=[
            pl.BlockSpec((None, S, D), lambda i: (i, 0, 0)),
            pl.BlockSpec((D, C), lambda i: (0, 0)),
            pl.BlockSpec((1, C), lambda i: (0, 0)),
        ],
        out_specs=pl.BlockSpec((None, 1, C), lambda i: (i, 0, 0)),
        compiler_params=pltpu.CompilerParams(dimension_semantics=("parallel",)),
    )(x, w, b.reshape(1, C))
    return out.reshape(B, C)


# ---------------------------------------------------------------------------
# Module composition (matches SignTransformer.forward, inference mode).
# ---------------------------------------------------------------------------
def multi_head_attention(xq, kv, p, *, h, d_k, d_v):
    B, Sq, D = xq.shape
    Sk = kv.shape[1]
    q = linear(xq.reshape(B * Sq, D), p["wq"], p["bq"])
    k = linear(kv.reshape(B * Sk, D), p["wk"], p["bk"])
    v = linear(kv.reshape(B * Sk, D), p["wv"], p["bv"])
    # Head split / merge is layout plumbing, done in the XLA wrapper.
    q = q.reshape(B, Sq, h, d_k).transpose(0, 2, 1, 3)
    k = k.reshape(B, Sk, h, d_k).transpose(0, 2, 1, 3)
    v = v.reshape(B, Sk, h, d_v).transpose(0, 2, 1, 3)
    o = scaled_dot_attention(q, k, v, d_k)                                # (B,h,Sq,dv)
    o = o.transpose(0, 2, 1, 3).reshape(B * Sq, h * d_v)
    return linear(o, p["wo"], p["bo"]).reshape(B, Sq, D)


def decoder_layer(x, enc, p, *, h, d_k, d_v):
    B, S, D = x.shape
    attn1 = multi_head_attention(x, x, p["mha1"], h=h, d_k=d_k, d_v=d_v)
    x = add_layernorm(x, attn1, p["ln1_g"], p["ln1_b"])
    attn2 = multi_head_attention(x, enc, p["mha2"], h=h, d_k=d_k, d_v=d_v)
    x = add_layernorm(x, attn2, p["ln2_g"], p["ln2_b"])
    ff = linear(x.reshape(B * S, D), p["ff_w1"], p["ff_b1"], activation="relu")
    ff = linear(ff, p["ff_w2"], p["ff_b2"]).reshape(B, S, D)
    return add_layernorm(x, ff, p["ln3_g"], p["ln3_b"])


def sign_transformer_forward(src, params, *, h, d_k, d_v):
    """Forward pass of SignTransformer (inference)."""
    B, S, _ = src.shape
    # TODO(synk): nn.Dropout layers are omitted (inference mode -> identity).
    # Note: SignTransformer calls the decoder with masks=None, so the
    # masked_fill branch of attention is unused and not implemented.
    x = src_proj_with_pe(src, params["src_w"], params["src_b"], params["pe"][:S])
    enc = jnp.tile(params["dummy_encoder"], (B, 1, 1))
    for layer_p in params["layers"]:
        x = decoder_layer(x, enc, layer_p, h=h, d_k=d_k, d_v=d_v)
    return pool_and_classify(x, params["cls_w"], params["cls_b"])


# ---------------------------------------------------------------------------
# Pure-JAX reference (same math, no Pallas) for correctness checking.
# ---------------------------------------------------------------------------
def reference_forward(src, params, *, h, d_k, d_v):
    B, S, _ = src.shape
    x = src @ params["src_w"] + params["src_b"]
    x = x + params["pe"][:S][None, :, :]
    enc = jnp.tile(params["dummy_encoder"], (B, 1, 1))

    def ref_mha(xq, kv, p):
        Bq, Sq, _ = xq.shape
        Sk = kv.shape[1]
        Q = (xq @ p["wq"] + p["bq"]).reshape(Bq, Sq, h, d_k).transpose(0, 2, 1, 3)
        K = (kv @ p["wk"] + p["bk"]).reshape(Bq, Sk, h, d_k).transpose(0, 2, 1, 3)
        V = (kv @ p["wv"] + p["bv"]).reshape(Bq, Sk, h, d_v).transpose(0, 2, 1, 3)
        s = jnp.einsum("bhqd,bhkd->bhqk", Q, K) / math.sqrt(d_k)
        a = jax.nn.softmax(s, axis=-1)
        o = jnp.einsum("bhqk,bhkd->bhqd", a, V)
        o = o.transpose(0, 2, 1, 3).reshape(Bq, Sq, h * d_v)
        return o @ p["wo"] + p["bo"]

    def ref_ln(z, g, b):
        mu = z.mean(-1, keepdims=True)
        var = ((z - mu) ** 2).mean(-1, keepdims=True)
        return (z - mu) / jnp.sqrt(var + LN_EPS) * g + b

    for p in params["layers"]:
        a1 = ref_mha(x, x, p["mha1"])
        x = ref_ln(x + a1, p["ln1_g"], p["ln1_b"])
        a2 = ref_mha(x, enc, p["mha2"])
        x = ref_ln(x + a2, p["ln2_g"], p["ln2_b"])
        f = jnp.maximum(x @ p["ff_w1"] + p["ff_b1"], 0.0)
        f = f @ p["ff_w2"] + p["ff_b2"]
        x = ref_ln(x + f, p["ln3_g"], p["ln3_b"])
    pooled = x.mean(axis=1)
    return pooled @ params["cls_w"] + params["cls_b"]


# ---------------------------------------------------------------------------
# Parameter construction.
# ---------------------------------------------------------------------------
def init_params(key, input_dim, d_model, num_classes, h, d_k, d_v, d_ff,
                n_layers, max_seq_len):
    keys = iter(jax.random.split(key, 64))

    def dense(i, o, scale=0.05):
        return jax.random.normal(next(keys), (i, o), jnp.float32) * scale

    def mha_params():
        return {
            "wq": dense(d_model, h * d_k), "bq": jnp.zeros((h * d_k,), jnp.float32),
            "wk": dense(d_model, h * d_k), "bk": jnp.zeros((h * d_k,), jnp.float32),
            "wv": dense(d_model, h * d_v), "bv": jnp.zeros((h * d_v,), jnp.float32),
            "wo": dense(h * d_v, d_model), "bo": jnp.zeros((d_model,), jnp.float32),
        }

    params = {
        "src_w": dense(input_dim, d_model),
        "src_b": jnp.zeros((d_model,), jnp.float32),
        "pe": _build_pe(d_model, max_seq_len),
        "dummy_encoder": jax.random.normal(next(keys), (1, max_seq_len, d_model),
                                           jnp.float32),
        "cls_w": dense(d_model, num_classes),
        "cls_b": jnp.zeros((num_classes,), jnp.float32),
        "layers": [],
    }
    for _ in range(n_layers):
        params["layers"].append({
            "mha1": mha_params(),
            "ln1_g": jnp.ones((d_model,), jnp.float32),
            "ln1_b": jnp.zeros((d_model,), jnp.float32),
            "mha2": mha_params(),
            "ln2_g": jnp.ones((d_model,), jnp.float32),
            "ln2_b": jnp.zeros((d_model,), jnp.float32),
            "ff_w1": dense(d_model, d_ff),
            "ff_b1": jnp.zeros((d_ff,), jnp.float32),
            "ff_w2": dense(d_ff, d_model),
            "ff_b2": jnp.zeros((d_model,), jnp.float32),
            "ln3_g": jnp.ones((d_model,), jnp.float32),
            "ln3_b": jnp.zeros((d_model,), jnp.float32),
        })
    return params


if __name__ == "__main__":
    INPUT_DIM, D_MODEL, NUM_CLASSES = 64, 32, 10
    H, D_K, D_V, D_FF, N_LAYERS = 4, 16, 16, 64, 2
    BATCH, SEQ = 2, 8

    key = jax.random.PRNGKey(0)
    pkey, xkey = jax.random.split(key)
    params = init_params(pkey, INPUT_DIM, D_MODEL, NUM_CLASSES,
                         H, D_K, D_V, D_FF, N_LAYERS, MAX_FRAMES)
    src = jax.random.normal(xkey, (BATCH, SEQ, INPUT_DIM), jnp.float32)

    fwd = jax.jit(functools.partial(sign_transformer_forward,
                                    h=H, d_k=D_K, d_v=D_V))
    logits = jax.block_until_ready(fwd(src, params))
    assert logits.shape == (BATCH, NUM_CLASSES), logits.shape

    ref = reference_forward(src, params, h=H, d_k=D_K, d_v=D_V)
    max_err = float(jnp.max(jnp.abs(logits - ref)))
    assert jnp.allclose(logits, ref, atol=5e-3, rtol=5e-3), (
        f"mismatch vs reference, max abs err = {max_err}")

    print("KERNEL_OK")
</pallas_src>

<mosaic_0001>
module attributes {stable_mosaic.version = 11 : i64} {
  func.func @_linear_kernel(%arg0: i32, %arg1: memref<16x32xf32, #tpu.memory_space<vmem>>, %arg2: memref<32x64xf32, #tpu.memory_space<vmem>>, %arg3: memref<1x64xf32, #tpu.memory_space<vmem>>, %arg4: memref<16x64xf32, #tpu.memory_space<vmem>>) attributes {dimension_semantics = [#tpu.dimension_semantics<parallel>], iteration_bounds = array<i64: 1>, scalar_prefetch = 0 : i64, scratch_operands = 0 : i64, tpu.core_type = #tpu.core_type<tc>, window_params = [{transform_indices = @transform_0, window_bounds = array<i64: 16, 32>}, {pipeline_mode = #tpu.pipeline_mode<synchronous>, transform_indices = @transform_1, window_bounds = array<i64: 32, 64>}, {pipeline_mode = #tpu.pipeline_mode<synchronous>, transform_indices = @transform_2, window_bounds = array<i64: 1, 64>}, {transform_indices = @transform_3, window_bounds = array<i64: 16, 64>}]} {
    %c0 = arith.constant 0 : index
    %c0_0 = arith.constant 0 : index
    %0 = vector.load %arg1[%c0, %c0_0] : memref<16x32xf32, #tpu.memory_space<vmem>>, vector<16x32xf32>
    %c0_1 = arith.constant 0 : index
    %c0_2 = arith.constant 0 : index
    %1 = vector.load %arg2[%c0_1, %c0_2] : memref<32x64xf32, #tpu.memory_space<vmem>>, vector<32x64xf32>
    %cst = arith.constant dense<0.000000e+00> : vector<16x64xf32>
    %2 = tpu.matmul %0, %1, %cst {dimension_numbers = #tpu.dot_dimension_numbers<[1], [0], [0], [1], [0, 0, 1, 1], [], []>, precision = #tpu.contract_precision<fp32>} : vector<16x32xf32>, vector<32x64xf32>, vector<16x64xf32> -> vector<16x64xf32>
    %c0_3 = arith.constant 0 : index
    %c0_4 = arith.constant 0 : index
    %3 = vector.load %arg3[%c0_3, %c0_4] : memref<1x64xf32, #tpu.memory_space<vmem>>, vector<1x64xf32>
    %4 = vector.broadcast %3 : vector<1x64xf32> to vector<16x64xf32>
    %5 = arith.addf %2, %4 : vector<16x64xf32>
    %c0_5 = arith.constant 0 : index
    %c0_6 = arith.constant 0 : index
    %6 = vector.load %arg4[%c0_5, %c0_6] : memref<16x64xf32, #tpu.memory_space<vmem>>, vector<16x64xf32>
    tpu.vector_store %arg4[%c0_5, %c0_6], %5 {strides = array<i32>} : memref<16x64xf32, #tpu.memory_space<vmem>>, vector<16x64xf32>,
    return
  }
  func.func @transform_0(%arg0: i32) -> (i32, i32) {
    %c0_i32 = arith.constant 0 : i32
    %c0_i32_0 = arith.constant 0 : i32
    return %arg0, %c0_i32 : i32, i32
  }
  func.func @transform_1(%arg0: i32) -> (i32, i32) {
    %c0_i32 = arith.constant 0 : i32
    %c0_i32_0 = arith.constant 0 : i32
    %c0_i32_1 = arith.constant 0 : i32
    return %c0_i32, %c0_i32_0 : i32, i32
  }
  func.func @transform_2(%arg0: i32) -> (i32, i32) {
    %c0_i32 = arith.constant 0 : i32
    %c0_i32_0 = arith.constant 0 : i32
    %c0_i32_1 = arith.constant 0 : i32
    return %c0_i32, %c0_i32_0 : i32, i32
  }
  func.func @transform_3(%arg0: i32) -> (i32, i32) {
    %c0_i32 = arith.constant 0 : i32
    %c0_i32_0 = arith.constant 0 : i32
    return %arg0, %c0_i32 : i32, i32
  }
}

module attributes {stable_mosaic.version = 11 : i64} {
  func.func @_src_proj_pe_kernel(%arg0: i32, %arg1: memref<1x8x64xf32, #tpu.memory_space<vmem>>, %arg2: memref<64x32xf32, #tpu.memory_space<vmem>>, %arg3: memref<1x32xf32, #tpu.memory_space<vmem>>, %arg4: memref<8x32xf32, #tpu.memory_space<vmem>>, %arg5: memref<1x8x32xf32, #tpu.memory_space<vmem>>) attributes {dimension_semantics = [#tpu.dimension_semantics<parallel>], iteration_bounds = array<i64: 2>, scalar_prefetch = 0 : i64, scratch_operands = 0 : i64, tpu.core_type = #tpu.core_type<tc>, window_params = [{transform_indices = @transform_0, window_bounds = array<i64: 1, 8, 64>}, {pipeline_mode = #tpu.pipeline_mode<synchronous>, transform_indices = @transform_1, window_bounds = array<i64: 64, 32>}, {pipeline_mode = #tpu.pipeline_mode<synchronous>, transform_indices = @transform_2, window_bounds = array<i64: 1, 32>}, {pipeline_mode = #tpu.pipeline_mode<synchronous>, transform_indices = @transform_3, window_bounds = array<i64: 8, 32>}, {transform_indices = @transform_4, window_bounds = array<i64: 1, 8, 32>}]} {
    %c0 = arith.constant 0 : index
    %c0_0 = arith.constant 0 : index
    %c0_1 = arith.constant 0 : index
    %0 = vector.load %arg1[%c0, %c0_0, %c0_1] : memref<1x8x64xf32, #tpu.memory_space<vmem>>, vector<1x8x64xf32>
    %1 = vector.shape_cast %0 : vector<1x8x64xf32> to vector<8x64xf32>
    %c0_2 = arith.constant 0 : index
    %c0_3 = arith.constant 0 : index
    %2 = vector.load %arg2[%c0_2, %c0_3] : memref<64x32xf32, #tpu.memory_space<vmem>>, vector<64x32xf32>
    %cst = arith.constant dense<0.000000e+00> : vector<8x32xf32>
    %3 = tpu.matmul %1, %2, %cst {dimension_numbers = #tpu.dot_dimension_numbers<[1], [0], [0], [1], [0, 0, 1, 1], [], []>, precision = #tpu.contract_precision<fp32>} : vector<8x64xf32>, vector<64x32xf32>, vector<8x32xf32> -> vector<8x32xf32>
    %c0_4 = arith.constant 0 : index
    %c0_5 = arith.constant 0 : index
    %4 = vector.load %arg3[%c0_4, %c0_5] : memref<1x32xf32, #tpu.memory_space<vmem>>, vector<1x32xf32>
    %5 = vector.broadcast %4 : vector<1x32xf32> to vector<8x32xf32>
    %6 = arith.addf %3, %5 : vector<8x32xf32>
    %c0_6 = arith.constant 0 : index
    %c0_7 = arith.constant 0 : index
    %7 = vector.load %arg4[%c0_6, %c0_7] : memref<8x32xf32, #tpu.memory_space<vmem>>, vector<8x32xf32>
    %8 = arith.addf %6, %7 : vector<8x32xf32>
    %c0_8 = arith.constant 0 : index
    %c0_9 = arith.constant 0 : index
    %c0_10 = arith.constant 0 : index
    %9 = vector.load %arg5[%c0_8, %c0_9, %c0_10] : memref<1x8x32xf32, #tpu.memory_space<vmem>>, vector<1x8x32xf32>
    %10 = vector.shape_cast %9 : vector<1x8x32xf32> to vector<8x32xf32>
    %11 = vector.shape_cast %8 : vector<8x32xf32> to vector<1x8x32xf32>
    tpu.vector_store %arg5[%c0_8, %c0_9, %c0_10], %11 {strides = array<i32>} : memref<1x8x32xf32, #tpu.memory_space<vmem>>, vector<1x8x32xf32>,
    return
  }
  func.func @transform_0(%arg0: i32) -> (i32, i32, i32) {
    %c0_i32 = arith.constant 0 : i32
    %c0_i32_0 = arith.constant 0 : i32
    %c0_i32_1 = arith.constant 0 : i32
    return %arg0, %c0_i32, %c0_i32_0 : i32, i32, i32
  }
  func.func @transform_1(%arg0: i32) -> (i32, i32) {
    %c0_i32 = arith.constant 0 : i32
    %c0_i32_0 = arith.constant 0 : i32
    %c0_i32_1 = arith.constant 0 : i32
    return %c0_i32, %c0_i32_0 : i32, i32
  }
  func.func @transform_2(%arg0: i32) -> (i32, i32) {
    %c0_i32 = arith.constant 0 : i32
    %c0_i32_0 = arith.constant 0 : i32
    %c0_i32_1 = arith.constant 0 : i32
    return %c0_i32, %c0_i32_0 : i32, i32
  }
  func.func @transform_3(%arg0: i32) -> (i32, i32) {
    %c0_i32 = arith.constant 0 : i32
    %c0_i32_0 = arith.constant 0 : i32
    %c0_i32_1 = arith.constant 0 : i32
    return %c0_i32, %c0_i32_0 : i32, i32
  }
  func.func @transform_4(%arg0: i32) -> (i32, i32, i32) {
    %c0_i32 = arith.constant 0 : i32
    %c0_i32_0 = arith.constant 0 : i32
    %c0_i32_1 = arith.constant 0 : i32
    return %arg0, %c0_i32, %c0_i32_0 : i32, i32, i32
  }
}

module attributes {stable_mosaic.version = 11 : i64} {
  func.func @_attention_kernel(%arg0: i32, %arg1: i32, %arg2: memref<1x1x8x16xf32, #tpu.memory_space<vmem>>, %arg3: memref<1x1x8x16xf32, #tpu.memory_space<vmem>>, %arg4: memref<1x1x8x16xf32, #tpu.memory_space<vmem>>, %arg5: memref<1x1x8x16xf32, #tpu.memory_space<vmem>>) attributes {dimension_semantics = [#tpu.dimension_semantics<parallel>, #tpu.dimension_semantics<parallel>], iteration_bounds = array<i64: 2, 4>, scalar_prefetch = 0 : i64, scratch_operands = 0 : i64, tpu.core_type = #tpu.core_type<tc>, window_params = [{transform_indices = @transform_0, window_bounds = array<i64: 1, 1, 8, 16>}, {transform_indices = @transform_1, window_bounds = array<i64: 1, 1, 8, 16>}, {transform_indices = @transform_2, window_bounds = array<i64: 1, 1, 8, 16>}, {transform_indices = @transform_3, window_bounds = array<i64: 1, 1, 8, 16>}]} {
    %c0 = arith.constant 0 : index
    %c0_0 = arith.constant 0 : index
    %c0_1 = arith.constant 0 : index
    %c0_2 = arith.constant 0 : index
    %0 = vector.load %arg2[%c0, %c0_0, %c0_1, %c0_2] : memref<1x1x8x16xf32, #tpu.memory_space<vmem>>, vector<1x1x8x16xf32>
    %1 = vector.shape_cast %0 : vector<1x1x8x16xf32> to vector<8x16xf32>
    %c0_3 = arith.constant 0 : index
    %c0_4 = arith.constant 0 : index
    %c0_5 = arith.constant 0 : index
    %c0_6 = arith.constant 0 : index
    %2 = vector.load %arg3[%c0_3, %c0_4, %c0_5, %c0_6] : memref<1x1x8x16xf32, #tpu.memory_space<vmem>>, vector<1x1x8x16xf32>
    %3 = vector.shape_cast %2 : vector<1x1x8x16xf32> to vector<8x16xf32>
    %c0_7 = arith.constant 0 : index
    %c0_8 = arith.constant 0 : index
    %c0_9 = arith.constant 0 : index
    %c0_10 = arith.constant 0 : index
    %4 = vector.load %arg4[%c0_7, %c0_8, %c0_9, %c0_10] : memref<1x1x8x16xf32, #tpu.memory_space<vmem>>, vector<1x1x8x16xf32>
    %5 = vector.shape_cast %4 : vector<1x1x8x16xf32> to vector<8x16xf32>
    %cst = arith.constant dense<0.000000e+00> : vector<8x8xf32>
    %6 = tpu.matmul %1, %3, %cst {dimension_numbers = #tpu.dot_dimension_numbers<[1], [1], [0], [0], [0, 0, 1, 0], [], []>, precision = #tpu.contract_precision<fp32>} : vector<8x16xf32>, vector<8x16xf32>, vector<8x8xf32> -> vector<8x8xf32>
    %cst_11 = arith.constant 2.500000e-01 : f32
    %7 = vector.broadcast %cst_11 : f32 to vector<8x8xf32>
    %8 = arith.mulf %6, %7 : vector<8x8xf32>
    %cst_12 = arith.constant dense<0xFF800000> : vector<8xf32>
    %9 = vector.multi_reduction <maximumf>, %8, %cst_12 [1] : vector<8x8xf32> to vector<8xf32>
    %10 = vector.shape_cast %9 : vector<8xf32> to vector<8x1xf32>
    %11 = vector.broadcast %10 : vector<8x1xf32> to vector<8x8xf32>
    %12 = arith.subf %8, %11 : vector<8x8xf32>
    %13 = math.exp %12 : vector<8x8xf32>
    %cst_13 = arith.constant dense<0.000000e+00> : vector<8xf32>
    %14 = vector.multi_reduction <add>, %13, %cst_13 [1] : vector<8x8xf32> to vector<8xf32>
    %15 = vector.shape_cast %14 : vector<8xf32> to vector<8x1xf32>
    %16 = vector.broadcast %15 : vector<8x1xf32> to vector<8x8xf32>
    %17 = arith.divf %13, %16 : vector<8x8xf32>
    %cst_14 = arith.constant dense<0.000000e+00> : vector<8x16xf32>
    %18 = tpu.matmul %17, %5, %cst_14 {dimension_numbers = #tpu.dot_dimension_numbers<[1], [0], [0], [1], [0, 0, 1, 1], [], []>, precision = #tpu.contract_precision<fp32>} : vector<8x8xf32>, vector<8x16xf32>, vector<8x16xf32> -> vector<8x16xf32>
    %c0_15 = arith.constant 0 : index
    %c0_16 = arith.constant 0 : index
    %c0_17 = arith.constant 0 : index
    %c0_18 = arith.constant 0 : index
    %19 = vector.load %arg5[%c0_15, %c0_16, %c0_17, %c0_18] : memref<1x1x8x16xf32, #tpu.memory_space<vmem>>, vector<1x1x8x16xf32>
    %20 = vector.shape_cast %19 : vector<1x1x8x16xf32> to vector<8x16xf32>
    %21 = vector.shape_cast %18 : vector<8x16xf32> to vector<1x1x8x16xf32>
    tpu.vector_store %arg5[%c0_15, %c0_16, %c0_17, %c0_18], %21 {strides = array<i32>} : memref<1x1x8x16xf32, #tpu.memory_space<vmem>>, vector<1x1x8x16xf32>,
    return
  }
  func.func @transform_0(%arg0: i32, %arg1: i32) -> (i32, i32, i32, i32) {
    %c0_i32 = arith.constant 0 : i32
    %c0_i32_0 = arith.constant 0 : i32
    %c0_i32_1 = arith.constant 0 : i32
    return %arg0, %arg1, %c0_i32, %c0_i32_0 : i32, i32, i32, i32
  }
  func.func @transform_1(%arg0: i32, %arg1: i32) -> (i32, i32, i32, i32) {
    %c0_i32 = arith.constant 0 : i32
    %c0_i32_0 = arith.constant 0 : i32
    %c0_i32_1 = arith.constant 0 : i32
    return %arg0, %arg1, %c0_i32, %c0_i32_0 : i32, i32, i32, i32
  }
  func.func @transform_2(%arg0: i32, %arg1: i32) -> (i32, i32, i32, i32) {
    %c0_i32 = arith.constant 0 : i32
    %c0_i32_0 = arith.constant 0 : i32
    %c0_i32_1 = arith.constant 0 : i32
    return %arg0, %arg1, %c0_i32, %c0_i32_0 : i32, i32, i32, i32
  }
  func.func @transform_3(%arg0: i32, %arg1: i32) -> (i32, i32, i32, i32) {
    %c0_i32 = arith.constant 0 : i32
    %c0_i32_0 = arith.constant 0 : i32
    %c0_i32_1 = arith.constant 0 : i32
    return %arg0, %arg1, %c0_i32, %c0_i32_0 : i32, i32, i32, i32
  }
}

module attributes {stable_mosaic.version = 11 : i64} {
  func.func @_linear_kernel(%arg0: i32, %arg1: memref<16x64xf32, #tpu.memory_space<vmem>>, %arg2: memref<64x32xf32, #tpu.memory_space<vmem>>, %arg3: memref<1x32xf32, #tpu.memory_space<vmem>>, %arg4: memref<16x32xf32, #tpu.memory_space<vmem>>) attributes {dimension_semantics = [#tpu.dimension_semantics<parallel>], iteration_bounds = array<i64: 1>, scalar_prefetch = 0 : i64, scratch_operands = 0 : i64, tpu.core_type = #tpu.core_type<tc>, window_params = [{transform_indices = @transform_0, window_bounds = array<i64: 16, 64>}, {pipeline_mode = #tpu.pipeline_mode<synchronous>, transform_indices = @transform_1, window_bounds = array<i64: 64, 32>}, {pipeline_mode = #tpu.pipeline_mode<synchronous>, transform_indices = @transform_2, window_bounds = array<i64: 1, 32>}, {transform_indices = @transform_3, window_bounds = array<i64: 16, 32>}]} {
    %c0 = arith.constant 0 : index
    %c0_0 = arith.constant 0 : index
    %0 = vector.load %arg1[%c0, %c0_0] : memref<16x64xf32, #tpu.memory_space<vmem>>, vector<16x64xf32>
    %c0_1 = arith.constant 0 : index
    %c0_2 = arith.constant 0 : index
    %1 = vector.load %arg2[%c0_1, %c0_2] : memref<64x32xf32, #tpu.memory_space<vmem>>, vector<64x32xf32>
    %cst = arith.constant dense<0.000000e+00> : vector<16x32xf32>
    %2 = tpu.matmul %0, %1, %cst {dimension_numbers = #tpu.dot_dimension_numbers<[1], [0], [0], [1], [0, 0, 1, 1], [], []>, precision = #tpu.contract_precision<fp32>} : vector<16x64xf32>, vector<64x32xf32>, vector<16x32xf32> -> vector<16x32xf32>
    %c0_3 = arith.constant 0 : index
    %c0_4 = arith.constant 0 : index
    %3 = vector.load %arg3[%c0_3, %c0_4] : memref<1x32xf32, #tpu.memory_space<vmem>>, vector<1x32xf32>
    %4 = vector.broadcast %3 : vector<1x32xf32> to vector<16x32xf32>
    %5 = arith.addf %2, %4 : vector<16x32xf32>
    %c0_5 = arith.constant 0 : index
    %c0_6 = arith.constant 0 : index
    %6 = vector.load %arg4[%c0_5, %c0_6] : memref<16x32xf32, #tpu.memory_space<vmem>>, vector<16x32xf32>
    tpu.vector_store %arg4[%c0_5, %c0_6], %5 {strides = array<i32>} : memref<16x32xf32, #tpu.memory_space<vmem>>, vector<16x32xf32>,
    return
  }
  func.func @transform_0(%arg0: i32) -> (i32, i32) {
    %c0_i32 = arith.constant 0 : i32
    %c0_i32_0 = arith.constant 0 : i32
    return %arg0, %c0_i32 : i32, i32
  }
  func.func @transform_1(%arg0: i32) -> (i32, i32) {
    %c0_i32 = arith.constant 0 : i32
    %c0_i32_0 = arith.constant 0 : i32
    %c0_i32_1 = arith.constant 0 : i32
    return %c0_i32, %c0_i32_0 : i32, i32
  }
  func.func @transform_2(%arg0: i32) -> (i32, i32) {
    %c0_i32 = arith.constant 0 : i32
    %c0_i32_0 = arith.constant 0 : i32
    %c0_i32_1 = arith.constant 0 : i32
    return %c0_i32, %c0_i32_0 : i32, i32
  }
  func.func @transform_3(%arg0: i32) -> (i32, i32) {
    %c0_i32 = arith.constant 0 : i32
    %c0_i32_0 = arith.constant 0 : i32
    return %arg0, %c0_i32 : i32, i32
  }
}

module attributes {stable_mosaic.version = 11 : i64} {
  func.func @_add_layernorm_kernel(%arg0: i32, %arg1: memref<16x32xf32, #tpu.memory_space<vmem>>, %arg2: memref<16x32xf32, #tpu.memory_space<vmem>>, %arg3: memref<1x32xf32, #tpu.memory_space<vmem>>, %arg4: memref<1x32xf32, #tpu.memory_space<vmem>>, %arg5: memref<16x32xf32, #tpu.memory_space<vmem>>) attributes {dimension_semantics = [#tpu.dimension_semantics<parallel>], iteration_bounds = array<i64: 1>, scalar_prefetch = 0 : i64, scratch_operands = 0 : i64, tpu.core_type = #tpu.core_type<tc>, window_params = [{transform_indices = @transform_0, window_bounds = array<i64: 16, 32>}, {transform_indices = @transform_1, window_bounds = array<i64: 16, 32>}, {pipeline_mode = #tpu.pipeline_mode<synchronous>, transform_indices = @transform_2, window_bounds = array<i64: 1, 32>}, {pipeline_mode = #tpu.pipeline_mode<synchronous>, transform_indices = @transform_3, window_bounds = array<i64: 1, 32>}, {transform_indices = @transform_4, window_bounds = array<i64: 16, 32>}]} {
    %c0 = arith.constant 0 : index
    %c0_0 = arith.constant 0 : index
    %0 = vector.load %arg1[%c0, %c0_0] : memref<16x32xf32, #tpu.memory_space<vmem>>, vector<16x32xf32>
    %c0_1 = arith.constant 0 : index
    %c0_2 = arith.constant 0 : index
    %1 = vector.load %arg2[%c0_1, %c0_2] : memref<16x32xf32, #tpu.memory_space<vmem>>, vector<16x32xf32>
    %2 = arith.addf %0, %1 : vector<16x32xf32>
    %cst = arith.constant dense<0.000000e+00> : vector<16xf32>
    %3 = vector.multi_reduction <add>, %2, %cst [1] : vector<16x32xf32> to vector<16xf32>
    %4 = vector.shape_cast %3 : vector<16xf32> to vector<16x1xf32>
    %cst_3 = arith.constant 3.200000e+01 : f32
    %5 = vector.broadcast %cst_3 : f32 to vector<16x1xf32>
    %6 = arith.divf %4, %5 : vector<16x1xf32>
    %7 = vector.broadcast %6 : vector<16x1xf32> to vector<16x32xf32>
    %8 = arith.subf %2, %7 : vector<16x32xf32>
    %9 = arith.mulf %8, %8 : vector<16x32xf32>
    %cst_4 = arith.constant dense<0.000000e+00> : vector<16xf32>
    %10 = vector.multi_reduction <add>, %9, %cst_4 [1] : vector<16x32xf32> to vector<16xf32>
    %11 = vector.shape_cast %10 : vector<16xf32> to vector<16x1xf32>
    %cst_5 = arith.constant 3.200000e+01 : f32
    %12 = vector.broadcast %cst_5 : f32 to vector<16x1xf32>
    %13 = arith.divf %11, %12 : vector<16x1xf32>
    %cst_6 = arith.constant 9.99999974E-6 : f32
    %14 = vector.broadcast %cst_6 : f32 to vector<16x1xf32>
    %15 = arith.addf %13, %14 : vector<16x1xf32>
    %16 = math.rsqrt %15 : vector<16x1xf32>
    %17 = vector.broadcast %16 : vector<16x1xf32> to vector<16x32xf32>
    %18 = arith.mulf %8, %17 : vector<16x32xf32>
    %c0_7 = arith.constant 0 : index
    %c0_8 = arith.constant 0 : index
    %19 = vector.load %arg3[%c0_7, %c0_8] : memref<1x32xf32, #tpu.memory_space<vmem>>, vector<1x32xf32>
    %20 = vector.broadcast %19 : vector<1x32xf32> to vector<16x32xf32>
    %21 = arith.mulf %18, %20 : vector<16x32xf32>
    %c0_9 = arith.constant 0 : index
    %c0_10 = arith.constant 0 : index
    %22 = vector.load %arg4[%c0_9, %c0_10] : memref<1x32xf32, #tpu.memory_space<vmem>>, vector<1x32xf32>
    %23 = vector.broadcast %22 : vector<1x32xf32> to vector<16x32xf32>
    %24 = arith.addf %21, %23 : vector<16x32xf32>
    %c0_11 = arith.constant 0 : index
    %c0_12 = arith.constant 0 : index
    %25 = vector.load %arg5[%c0_11, %c0_12] : memref<16x32xf32, #tpu.memory_space<vmem>>, vector<16x32xf32>
    tpu.vector_store %arg5[%c0_11, %c0_12], %24 {strides = array<i32>} : memref<16x32xf32, #tpu.memory_space<vmem>>, vector<16x32xf32>,
    return
  }
  func.func @transform_0(%arg0: i32) -> (i32, i32) {
    %c0_i32 = arith.constant 0 : i32
    %c0_i32_0 = arith.constant 0 : i32
    return %arg0, %c0_i32 : i32, i32
  }
  func.func @transform_1(%arg0: i32) -> (i32, i32) {
    %c0_i32 = arith.constant 0 : i32
    %c0_i32_0 = arith.constant 0 : i32
    return %arg0, %c0_i32 : i32, i32
  }
  func.func @transform_2(%arg0: i32) -> (i32, i32) {
    %c0_i32 = arith.constant 0 : i32
    %c0_i32_0 = arith.constant 0 : i32
    %c0_i32_1 = arith.constant 0 : i32
    return %c0_i32, %c0_i32_0 : i32, i32
  }
  func.func @transform_3(%arg0: i32) -> (i32, i32) {
    %c0_i32 = arith.constant 0 : i32
    %c0_i32_0 = arith.constant 0 : i32
    %c0_i32_1 = arith.constant 0 : i32
    return %c0_i32, %c0_i32_0 : i32, i32
  }
  func.func @transform_4(%arg0: i32) -> (i32, i32) {
    %c0_i32 = arith.constant 0 : i32
    %c0_i32_0 = arith.constant 0 : i32
    return %arg0, %c0_i32 : i32, i32
  }
}

module attributes {stable_mosaic.version = 11 : i64} {
  func.func @_linear_kernel(%arg0: i32, %arg1: memref<60x32xf32, #tpu.memory_space<vmem>>, %arg2: memref<32x64xf32, #tpu.memory_space<vmem>>, %arg3: memref<1x64xf32, #tpu.memory_space<vmem>>, %arg4: memref<60x64xf32, #tpu.memory_space<vmem>>) attributes {dimension_semantics = [#tpu.dimension_semantics<parallel>], iteration_bounds = array<i64: 1>, scalar_prefetch = 0 : i64, scratch_operands = 0 : i64, tpu.core_type = #tpu.core_type<tc>, window_params = [{transform_indices = @transform_0, window_bounds = array<i64: 60, 32>}, {pipeline_mode = #tpu.pipeline_mode<synchronous>, transform_indices = @transform_1, window_bounds = array<i64: 32, 64>}, {pipeline_mode = #tpu.pipeline_mode<synchronous>, transform_indices = @transform_2, window_bounds = array<i64: 1, 64>}, {transform_indices = @transform_3, window_bounds = array<i64: 60, 64>}]} {
    %c0 = arith.constant 0 : index
    %c0_0 = arith.constant 0 : index
    %0 = vector.load %arg1[%c0, %c0_0] : memref<60x32xf32, #tpu.memory_space<vmem>>, vector<60x32xf32>
    %c0_1 = arith.constant 0 : index
    %c0_2 = arith.constant 0 : index
    %1 = vector.load %arg2[%c0_1, %c0_2] : memref<32x64xf32, #tpu.memory_space<vmem>>, vector<32x64xf32>
    %cst = arith.constant dense<0.000000e+00> : vector<60x64xf32>
    %2 = tpu.matmul %0, %1, %cst {dimension_numbers = #tpu.dot_dimension_numbers<[1], [0], [0], [1], [0, 0, 1, 1], [], []>, precision = #tpu.contract_precision<fp32>} : vector<60x32xf32>, vector<32x64xf32>, vector<60x64xf32> -> vector<60x64xf32>
    %c0_3 = arith.constant 0 : index
    %c0_4 = arith.constant 0 : index
    %3 = vector.load %arg3[%c0_3, %c0_4] : memref<1x64xf32, #tpu.memory_space<vmem>>, vector<1x64xf32>
    %4 = vector.broadcast %3 : vector<1x64xf32> to vector<60x64xf32>
    %5 = arith.addf %2, %4 : vector<60x64xf32>
    %c0_5 = arith.constant 0 : index
    %c0_6 = arith.constant 0 : index
    %6 = vector.load %arg4[%c0_5, %c0_6] : memref<60x64xf32, #tpu.memory_space<vmem>>, vector<60x64xf32>
    tpu.vector_store %arg4[%c0_5, %c0_6], %5 {strides = array<i32>} : memref<60x64xf32, #tpu.memory_space<vmem>>, vector<60x64xf32>,
    return
  }
  func.func @transform_0(%arg0: i32) -> (i32, i32) {
    %c0_i32 = arith.constant 0 : i32
    %c0_i32_0 = arith.constant 0 : i32
    return %arg0, %c0_i32 : i32, i32
  }
  func.func @transform_1(%arg0: i32) -> (i32, i32) {
    %c0_i32 = arith.constant 0 : i32
    %c0_i32_0 = arith.constant 0 : i32
    %c0_i32_1 = arith.constant 0 : i32
    return %c0_i32, %c0_i32_0 : i32, i32
  }
  func.func @transform_2(%arg0: i32) -> (i32, i32) {
    %c0_i32 = arith.constant 0 : i32
    %c0_i32_0 = arith.constant 0 : i32
    %c0_i32_1 = arith.constant 0 : i32
    return %c0_i32, %c0_i32_0 : i32, i32
  }
  func.func @transform_3(%arg0: i32) -> (i32, i32) {
    %c0_i32 = arith.constant 0 : i32
    %c0_i32_0 = arith.constant 0 : i32
    return %arg0, %c0_i32 : i32, i32
  }
}

module attributes {stable_mosaic.version = 11 : i64} {
  func.func @_attention_kernel(%arg0: i32, %arg1: i32, %arg2: memref<1x1x8x16xf32, #tpu.memory_space<vmem>>, %arg3: memref<1x1x30x16xf32, #tpu.memory_space<vmem>>, %arg4: memref<1x1x30x16xf32, #tpu.memory_space<vmem>>, %arg5: memref<1x1x8x16xf32, #tpu.memory_space<vmem>>) attributes {dimension_semantics = [#tpu.dimension_semantics<parallel>, #tpu.dimension_semantics<parallel>], iteration_bounds = array<i64: 2, 4>, scalar_prefetch = 0 : i64, scratch_operands = 0 : i64, tpu.core_type = #tpu.core_type<tc>, window_params = [{transform_indices = @transform_0, window_bounds = array<i64: 1, 1, 8, 16>}, {transform_indices = @transform_1, window_bounds = array<i64: 1, 1, 30, 16>}, {transform_indices = @transform_2, window_bounds = array<i64: 1, 1, 30, 16>}, {transform_indices = @transform_3, window_bounds = array<i64: 1, 1, 8, 16>}]} {
    %c0 = arith.constant 0 : index
    %c0_0 = arith.constant 0 : index
    %c0_1 = arith.constant 0 : index
    %c0_2 = arith.constant 0 : index
    %0 = vector.load %arg2[%c0, %c0_0, %c0_1, %c0_2] : memref<1x1x8x16xf32, #tpu.memory_space<vmem>>, vector<1x1x8x16xf32>
    %1 = vector.shape_cast %0 : vector<1x1x8x16xf32> to vector<8x16xf32>
    %c0_3 = arith.constant 0 : index
    %c0_4 = arith.constant 0 : index
    %c0_5 = arith.constant 0 : index
    %c0_6 = arith.constant 0 : index
    %2 = vector.load %arg3[%c0_3, %c0_4, %c0_5, %c0_6] : memref<1x1x30x16xf32, #tpu.memory_space<vmem>>, vector<1x1x30x16xf32>
    %3 = vector.shape_cast %2 : vector<1x1x30x16xf32> to vector<30x16xf32>
    %c0_7 = arith.constant 0 : index
    %c0_8 = arith.constant 0 : index
    %c0_9 = arith.constant 0 : index
    %c0_10 = arith.constant 0 : index
    %4 = vector.load %arg4[%c0_7, %c0_8, %c0_9, %c0_10] : memref<1x1x30x16xf32, #tpu.memory_space<vmem>>, vector<1x1x30x16xf32>
    %5 = vector.shape_cast %4 : vector<1x1x30x16xf32> to vector<30x16xf32>
    %cst = arith.constant dense<0.000000e+00> : vector<8x30xf32>
    %6 = tpu.matmul %1, %3, %cst {dimension_numbers = #tpu.dot_dimension_numbers<[1], [1], [0], [0], [0, 0, 1, 0], [], []>, precision = #tpu.contract_precision<fp32>} : vector<8x16xf32>, vector<30x16xf32>, vector<8x30xf32> -> vector<8x30xf32>
    %cst_11 = arith.constant 2.500000e-01 : f32
    %7 = vector.broadcast %cst_11 : f32 to vector<8x30xf32>
    %8 = arith.mulf %6, %7 : vector<8x30xf32>
    %cst_12 = arith.constant dense<0xFF800000> : vector<8xf32>
    %9 = vector.multi_reduction <maximumf>, %8, %cst_12 [1] : vector<8x30xf32> to vector<8xf32>
    %10 = vector.shape_cast %9 : vector<8xf32> to vector<8x1xf32>
    %11 = vector.broadcast %10 : vector<8x1xf32> to vector<8x30xf32>
    %12 = arith.subf %8, %11 : vector<8x30xf32>
    %13 = math.exp %12 : vector<8x30xf32>
    %cst_13 = arith.constant dense<0.000000e+00> : vector<8xf32>
    %14 = vector.multi_reduction <add>, %13, %cst_13 [1] : vector<8x30xf32> to vector<8xf32>
    %15 = vector.shape_cast %14 : vector<8xf32> to vector<8x1xf32>
    %16 = vector.broadcast %15 : vector<8x1xf32> to vector<8x30xf32>
    %17 = arith.divf %13, %16 : vector<8x30xf32>
    %cst_14 = arith.constant dense<0.000000e+00> : vector<8x16xf32>
    %18 = tpu.matmul %17, %5, %cst_14 {dimension_numbers = #tpu.dot_dimension_numbers<[1], [0], [0], [1], [0, 0, 1, 1], [], []>, precision = #tpu.contract_precision<fp32>} : vector<8x30xf32>, vector<30x16xf32>, vector<8x16xf32> -> vector<8x16xf32>
    %c0_15 = arith.constant 0 : index
    %c0_16 = arith.constant 0 : index
    %c0_17 = arith.constant 0 : index
    %c0_18 = arith.constant 0 : index
    %19 = vector.load %arg5[%c0_15, %c0_16, %c0_17, %c0_18] : memref<1x1x8x16xf32, #tpu.memory_space<vmem>>, vector<1x1x8x16xf32>
    %20 = vector.shape_cast %19 : vector<1x1x8x16xf32> to vector<8x16xf32>
    %21 = vector.shape_cast %18 : vector<8x16xf32> to vector<1x1x8x16xf32>
    tpu.vector_store %arg5[%c0_15, %c0_16, %c0_17, %c0_18], %21 {strides = array<i32>} : memref<1x1x8x16xf32, #tpu.memory_space<vmem>>, vector<1x1x8x16xf32>,
    return
  }
  func.func @transform_0(%arg0: i32, %arg1: i32) -> (i32, i32, i32, i32) {
    %c0_i32 = arith.constant 0 : i32
    %c0_i32_0 = arith.constant 0 : i32
    %c0_i32_1 = arith.constant 0 : i32
    return %arg0, %arg1, %c0_i32, %c0_i32_0 : i32, i32, i32, i32
  }
  func.func @transform_1(%arg0: i32, %arg1: i32) -> (i32, i32, i32, i32) {
    %c0_i32 = arith.constant 0 : i32
    %c0_i32_0 = arith.constant 0 : i32
    %c0_i32_1 = arith.constant 0 : i32
    return %arg0, %arg1, %c0_i32, %c0_i32_0 : i32, i32, i32, i32
  }
  func.func @transform_2(%arg0: i32, %arg1: i32) -> (i32, i32, i32, i32) {
    %c0_i32 = arith.constant 0 : i32
    %c0_i32_0 = arith.constant 0 : i32
    %c0_i32_1 = arith.constant 0 : i32
    return %arg0, %arg1, %c0_i32, %c0_i32_0 : i32, i32, i32, i32
  }
  func.func @transform_3(%arg0: i32, %arg1: i32) -> (i32, i32, i32, i32) {
    %c0_i32 = arith.constant 0 : i32
    %c0_i32_0 = arith.constant 0 : i32
    %c0_i32_1 = arith.constant 0 : i32
    return %arg0, %arg1, %c0_i32, %c0_i32_0 : i32, i32, i32, i32
  }
}

module attributes {stable_mosaic.version = 11 : i64} {
  func.func @_linear_kernel(%arg0: i32, %arg1: memref<16x32xf32, #tpu.memory_space<vmem>>, %arg2: memref<32x64xf32, #tpu.memory_space<vmem>>, %arg3: memref<1x64xf32, #tpu.memory_space<vmem>>, %arg4: memref<16x64xf32, #tpu.memory_space<vmem>>) attributes {dimension_semantics = [#tpu.dimension_semantics<parallel>], iteration_bounds = array<i64: 1>, scalar_prefetch = 0 : i64, scratch_operands = 0 : i64, tpu.core_type = #tpu.core_type<tc>, window_params = [{transform_indices = @transform_0, window_bounds = array<i64: 16, 32>}, {pipeline_mode = #tpu.pipeline_mode<synchronous>, transform_indices = @transform_1, window_bounds = array<i64: 32, 64>}, {pipeline_mode = #tpu.pipeline_mode<synchronous>, transform_indices = @transform_2, window_bounds = array<i64: 1, 64>}, {transform_indices = @transform_3, window_bounds = array<i64: 16, 64>}]} {
    %c0 = arith.constant 0 : index
    %c0_0 = arith.constant 0 : index
    %0 = vector.load %arg1[%c0, %c0_0] : memref<16x32xf32, #tpu.memory_space<vmem>>, vector<16x32xf32>
    %c0_1 = arith.constant 0 : index
    %c0_2 = arith.constant 0 : index
    %1 = vector.load %arg2[%c0_1, %c0_2] : memref<32x64xf32, #tpu.memory_space<vmem>>, vector<32x64xf32>
    %cst = arith.constant dense<0.000000e+00> : vector<16x64xf32>
    %2 = tpu.matmul %0, %1, %cst {dimension_numbers = #tpu.dot_dimension_numbers<[1], [0], [0], [1], [0, 0, 1, 1], [], []>, precision = #tpu.contract_precision<fp32>} : vector<16x32xf32>, vector<32x64xf32>, vector<16x64xf32> -> vector<16x64xf32>
    %c0_3 = arith.constant 0 : index
    %c0_4 = arith.constant 0 : index
    %3 = vector.load %arg3[%c0_3, %c0_4] : memref<1x64xf32, #tpu.memory_space<vmem>>, vector<1x64xf32>
    %4 = vector.broadcast %3 : vector<1x64xf32> to vector<16x64xf32>
    %5 = arith.addf %2, %4 : vector<16x64xf32>
    %cst_5 = arith.constant 0.000000e+00 : f32
    %6 = vector.broadcast %cst_5 : f32 to vector<16x64xf32>
    %7 = arith.maximumf %5, %6 : vector<16x64xf32>
    %c0_6 = arith.constant 0 : index
    %c0_7 = arith.constant 0 : index
    %8 = vector.load %arg4[%c0_6, %c0_7] : memref<16x64xf32, #tpu.memory_space<vmem>>, vector<16x64xf32>
    tpu.vector_store %arg4[%c0_6, %c0_7], %7 {strides = array<i32>} : memref<16x64xf32, #tpu.memory_space<vmem>>, vector<16x64xf32>,
    return
  }
  func.func @transform_0(%arg0: i32) -> (i32, i32) {
    %c0_i32 = arith.constant 0 : i32
    %c0_i32_0 = arith.constant 0 : i32
    return %arg0, %c0_i32 : i32, i32
  }
  func.func @transform_1(%arg0: i32) -> (i32, i32) {
    %c0_i32 = arith.constant 0 : i32
    %c0_i32_0 = arith.constant 0 : i32
    %c0_i32_1 = arith.constant 0 : i32
    return %c0_i32, %c0_i32_0 : i32, i32
  }
  func.func @transform_2(%arg0: i32) -> (i32, i32) {
    %c0_i32 = arith.constant 0 : i32
    %c0_i32_0 = arith.constant 0 : i32
    %c0_i32_1 = arith.constant 0 : i32
    return %c0_i32, %c0_i32_0 : i32, i32
  }
  func.func @transform_3(%arg0: i32) -> (i32, i32) {
    %c0_i32 = arith.constant 0 : i32
    %c0_i32_0 = arith.constant 0 : i32
    return %arg0, %c0_i32 : i32, i32
  }
}

module attributes {stable_mosaic.version = 11 : i64} {
  func.func @_pool_classify_kernel(%arg0: i32, %arg1: memref<1x8x32xf32, #tpu.memory_space<vmem>>, %arg2: memref<32x10xf32, #tpu.memory_space<vmem>>, %arg3: memref<1x10xf32, #tpu.memory_space<vmem>>, %arg4: memref<1x1x10xf32, #tpu.memory_space<vmem>>) attributes {dimension_semantics = [#tpu.dimension_semantics<parallel>], iteration_bounds = array<i64: 2>, scalar_prefetch = 0 : i64, scratch_operands = 0 : i64, tpu.core_type = #tpu.core_type<tc>, window_params = [{transform_indices = @transform_0, window_bounds = array<i64: 1, 8, 32>}, {pipeline_mode = #tpu.pipeline_mode<synchronous>, transform_indices = @transform_1, window_bounds = array<i64: 32, 10>}, {pipeline_mode = #tpu.pipeline_mode<synchronous>, transform_indices = @transform_2, window_bounds = array<i64: 1, 10>}, {transform_indices = @transform_3, window_bounds = array<i64: 1, 1, 10>}]} {
    %c0 = arith.constant 0 : index
    %c0_0 = arith.constant 0 : index
    %c0_1 = arith.constant 0 : index
    %0 = vector.load %arg1[%c0, %c0_0, %c0_1] : memref<1x8x32xf32, #tpu.memory_space<vmem>>, vector<1x8x32xf32>
    %1 = vector.shape_cast %0 : vector<1x8x32xf32> to vector<8x32xf32>
    %cst = arith.constant dense<0.000000e+00> : vector<32xf32>
    %2 = vector.multi_reduction <add>, %1, %cst [0] : vector<8x32xf32> to vector<32xf32>
    %3 = vector.shape_cast %2 : vector<32xf32> to vector<1x32xf32>
    %cst_2 = arith.constant 1.250000e-01 : f32
    %4 = vector.broadcast %cst_2 : f32 to vector<1x32xf32>
    %5 = arith.mulf %3, %4 : vector<1x32xf32>
    %c0_3 = arith.constant 0 : index
    %c0_4 = arith.constant 0 : index
    %6 = vector.load %arg2[%c0_3, %c0_4] : memref<32x10xf32, #tpu.memory_space<vmem>>, vector<32x10xf32>
    %cst_5 = arith.constant dense<0.000000e+00> : vector<1x10xf32>
    %7 = tpu.matmul %5, %6, %cst_5 {dimension_numbers = #tpu.dot_dimension_numbers<[1], [0], [0], [1], [0, 0, 1, 1], [], []>, precision = #tpu.contract_precision<fp32>} : vector<1x32xf32>, vector<32x10xf32>, vector<1x10xf32> -> vector<1x10xf32>
    %c0_6 = arith.constant 0 : index
    %c0_7 = arith.constant 0 : index
    %8 = vector.load %arg3[%c0_6, %c0_7] : memref<1x10xf32, #tpu.memory_space<vmem>>, vector<1x10xf32>
    %9 = arith.addf %7, %8 : vector<1x10xf32>
    %c0_8 = arith.constant 0 : index
    %c0_9 = arith.constant 0 : index
    %c0_10 = arith.constant 0 : index
    %10 = vector.load %arg4[%c0_8, %c0_9, %c0_10] : memref<1x1x10xf32, #tpu.memory_space<vmem>>, vector<1x1x10xf32>
    %11 = vector.shape_cast %10 : vector<1x1x10xf32> to vector<1x10xf32>
    %12 = vector.shape_cast %9 : vector<1x10xf32> to vector<1x1x10xf32>
    tpu.vector_store %arg4[%c0_8, %c0_9, %c0_10], %12 {strides = array<i32>} : memref<1x1x10xf32, #tpu.memory_space<vmem>>, vector<1x1x10xf32>,
    return
  }
  func.func @transform_0(%arg0: i32) -> (i32, i32, i32) {
    %c0_i32 = arith.constant 0 : i32
    %c0_i32_0 = arith.constant 0 : i32
    %c0_i32_1 = arith.constant 0 : i32
    return %arg0, %c0_i32, %c0_i32_0 : i32, i32, i32
  }
  func.func @transform_1(%arg0: i32) -> (i32, i32) {
    %c0_i32 = arith.constant 0 : i32
    %c0_i32_0 = arith.constant 0 : i32
    %c0_i32_1 = arith.constant 0 : i32
    return %c0_i32, %c0_i32_0 : i32, i32
  }
  func.func @transform_2(%arg0: i32) -> (i32, i32) {
    %c0_i32 = arith.constant 0 : i32
    %c0_i32_0 = arith.constant 0 : i32
    %c0_i32_1 = arith.constant 0 : i32
    return %c0_i32, %c0_i32_0 : i32, i32
  }
  func.func @transform_3(%arg0: i32) -> (i32, i32, i32) {
    %c0_i32 = arith.constant 0 : i32
    %c0_i32_0 = arith.constant 0 : i32
    %c0_i32_1 = arith.constant 0 : i32
    return %arg0, %c0_i32, %c0_i32_0 : i32, i32, i32
  }
}

</mosaic_0001>

<bundles_post_ra>
// kernel: tile.12
= control target key start
LH: loop header
LB: loop body
LE: loop exit
PB: predicated region body
PF: predicated region fallthrough
CT: control target
= control target key end

     0   :  { %vm162_vm0 = vcmask 1047556   ;;  %s304_s10 = smov 30   ;;  %vm164_vm1 = vcmask 244736   ;;  %vm201_vm2 = vcmask 490736   ;;  %s451_s0 = inlined_call_operand.vmem [shape: f32[2,1,1,30,32], index: 0, kind: input, shape index: {}]   ;;  %s452_s1 = inlined_call_operand.vmem [shape: f32[60,32], index: 1, kind: output, shape index: {}]  }
   0x1   :  { %v290_v0 = vld [vmem:[%s451_s0 + $0xe] sm:$0x3]  ;;  %v291_v1 = vld [vmem:[%s451_s0 + $0xc] sm:$0x3]  ;;  %v292_v2 = vld [vmem:[%s451_s0 + $0xa] sm:$0x3] }
   0x2   :  { %128 = vst [vmem:[#allocation0 + $0x38] sm:$0x3] %v290_v0  ;;  %133 = vst [vmem:[#allocation0 + $0x30] sm:$0x3] %v291_v1  ;;  %v293_v3 = vld [vmem:[%s451_s0 + $0x8] sm:$0x3] }
   0x3   :  { %138 = vst [vmem:[#allocation0 + $0x28] sm:$0x3] %v292_v2  ;;  %v294_v4 = vld [vmem:[%s451_s0 + $0x6] sm:$0x3]  ;;  %v295_v5 = vld [vmem:[%s451_s0 + $0x4] sm:$0x3] }
   0x4   :  { %143 = vst [vmem:[#allocation0 + $0x20] sm:$0x3] %v293_v3  ;;  %148 = vst [vmem:[#allocation0 + $0x18] sm:$0x3] %v294_v4  ;;  %v296_v6 = vld [vmem:[%s451_s0 + $0x2] sm:$0x3] }
   0x5   :  { %153 = vst [vmem:[#allocation0 + $0x10] sm:$0x3] %v295_v5  ;;  %v158_v7 = vld [vmem:[%s451_s0] sm:$0x3]  ;;  %157 = vst [vmem:[#allocation0 + $0x8] sm:$0x3] %v296_v6 }
   0x6   :  { %159 = vst [vmem:[#allocation0] sm:$0x3] %v158_v7  ;;  %v274_v8 = vld [vmem:[%s451_s0 + $0x2e] sm:$0x3]  ;;  %v275_v9 = vld [vmem:[%s451_s0 + $0x2c] sm:$0x3] }
   0x7   :  { %v276_v10 = vld [vmem:[%s451_s0 + $0x2a] sm:$0x3]  ;;  %48 = vst [vmem:[#allocation0 + $0xb8] sm:$0x3] %v274_v8  ;;  %53 = vst [vmem:[#allocation0 + $0xb0] sm:$0x3] %v275_v9 }
   0x8   :  { %58 = vst [vmem:[#allocation0 + $0xa8] sm:$0x3] %v276_v10  ;;  %v277_v11 = vld [vmem:[%s451_s0 + $0x28] sm:$0x3]  ;;  %v278_v12 = vld [vmem:[%s451_s0 + $0x26] sm:$0x3] }
   0x9   :  { %v279_v13 = vld [vmem:[%s451_s0 + $0x24] sm:$0x3]  ;;  %63 = vst [vmem:[#allocation0 + $0xa0] sm:$0x3] %v277_v11  ;;  %68 = vst [vmem:[#allocation0 + $0x98] sm:$0x3] %v278_v12 }
   0xa   :  { %73 = vst [vmem:[#allocation0 + $0x90] sm:$0x3] %v279_v13  ;;  %v280_v14 = vld [vmem:[%s451_s0 + $0x22] sm:$0x3]  ;;  %v281_v15 = vld [vmem:[%s451_s0 + $0x20] sm:$0x3] }
   0xb   :  { %v282_v16 = vld [vmem:[%s451_s0 + $0x1e] sm:$0x3]  ;;  %78 = vst [vmem:[#allocation0 + $0x88] sm:$0x3] %v280_v14  ;;  %83 = vst [vmem:[#allocation0 + $0x80] sm:$0x3] %v281_v15 }
   0xc   :  { %88 = vst [vmem:[#allocation0 + $0x78] sm:$0x3] %v282_v16  ;;  %v283_v17 = vld [vmem:[%s451_s0 + $0x1c] sm:$0x3]  ;;  %v284_v18 = vld [vmem:[%s451_s0 + $0x1a] sm:$0x3] }
   0xd   :  { %v285_v19 = vld [vmem:[%s451_s0 + $0x18] sm:$0x3]  ;;  %93 = vst [vmem:[#allocation0 + $0x70] sm:$0x3] %v283_v17  ;;  %98 = vst [vmem:[#allocation0 + $0x68] sm:$0x3] %v284_v18 }
   0xe   :  { %103 = vst [vmem:[#allocation0 + $0x60] sm:$0x3] %v285_v19  ;;  %v286_v20 = vld [vmem:[%s451_s0 + $0x16] sm:$0x3]  ;;  %v287_v21 = vld [vmem:[%s451_s0 + $0x14] sm:$0x3] }
   0xf   :  { %v288_v22 = vld [vmem:[%s451_s0 + $0x12] sm:$0x3]  ;;  %108 = vst [vmem:[#allocation0 + $0x58] sm:$0x3] %v286_v20  ;;  %113 = vst [vmem:[#allocation0 + $0x50] sm:$0x3] %v287_v21 }
  0x10   :  { %118 = vst [vmem:[#allocation0 + $0x48] sm:$0x3] %v288_v22  ;;  %v289_v23 = vld [vmem:[%s451_s0 + $0x10] sm:$0x3]  ;;  %v266_v24 = vld [vmem:[%s451_s0 + $0x3e] sm:$0x3] }
  0x11   :  { %v267_v25 = vld [vmem:[%s451_s0 + $0x3c] sm:$0x3]  ;;  %v196_v26 = vld [vmem:[#allocation0 + $0x1] ss:$8 sm:$0xf0]  }
  0x12   :  { %123 = vst [vmem:[#allocation0 + $0x40] sm:$0x3] %v289_v23  ;;  %8 = vst [vmem:[#allocation0 + $0xf8] sm:$0x3] %v266_v24  ;;  %v268_v27 = vld [vmem:[%s451_s0 + $0x3a] sm:$0x3] }
  0x13   :  { %13 = vst [vmem:[#allocation0 + $0xf0] sm:$0x3] %v267_v25  ;;  %v194_v28 = vld [vmem:[#allocation0 + $0x1] ss:$8 sm:$0xf]  }
  0x14   :  { %18 = vst [vmem:[#allocation0 + $0xe8] sm:$0x3] %v268_v27  ;;  %v269_v29 = vld [vmem:[%s451_s0 + $0x38] sm:$0x3]  ;;  %v198_v30 = vsel %vm162_vm0, %v196_v26, %v194_v28  ;;  %v270_v31 = vld [vmem:[%s451_s0 + $0x36] sm:$0x3] }
  0x15   :  { %23 = vst [vmem:[#allocation0 + $0xe0] sm:$0x3] %v269_v29  ;;  %v271_v32 = vld [vmem:[%s451_s0 + $0x34] sm:$0x3]  ;;  %v272_v33 = vld [vmem:[%s451_s0 + $0x32] sm:$0x3]  ;;  %199 = vrot.lane.b32.xlu0 %v198_v30, %s304_s10 }
  0x16   :  { %v217_v34 = vld [vmem:[#allocation0 + $0x81] ss:$8 sm:$0xf0]   ;;  %28 = vst [vmem:[#allocation0 + $0xd8] sm:$0x3] %v270_v31 }
  0x17   :  { %33 = vst [vmem:[#allocation0 + $0xd0] sm:$0x3] %v271_v32  ;;  %38 = vst [vmem:[#allocation0 + $0xc8] sm:$0x3] %v272_v33  ;;  %v273_v35 = vld [vmem:[%s451_s0 + $0x30] sm:$0x3] }
  0x18   :  { %v215_v36 = vld [vmem:[#allocation0 + $0x81] ss:$8 sm:$0xf]   ;;  %43 = vst [vmem:[#allocation0 + $0xc0] sm:$0x3] %v273_v35 }
  0x19   :  { %v160_v37 = vld [vmem:[#allocation0] ss:$8 sm:$0xf]   ;;  %v219_v38 = vsel %vm162_vm0, %v217_v34, %v215_v36  ;;  %v206_v39 = vld [vmem:[#allocation0 + $0x41] ss:$8 sm:$0xf0]  }
  0x1a   :  { %v161_v40 = vld [vmem:[#allocation0] ss:$8 sm:$0xf0]   ;;  %220 = vrot.lane.b32.xlu1 %v219_v38, %s304_s10  ;;  %v204_v44 = vld [vmem:[#allocation0 + $0x41] ss:$8 sm:$0xf]  }
  0x1b   :  { %v163_v41 = vsel %vm162_vm0, %v161_v40, %v160_v37  ;;  %v176_v42 = vld [vmem:[#allocation0 + $0x80] ss:$8 sm:$0xf]   ;;  %v208_v47 = vsel %vm162_vm0, %v206_v39, %v204_v44 }
  0x1c   :  { %v178_v43 = vld [vmem:[#allocation0 + $0x80] ss:$8 sm:$0xf0]   ;;  %165 = vst.msk [vmem:[%s452_s1] sm:$0xff] %vm164_vm1, %v163_v41   ;;  %209 = vrot.lane.b32.xlu0 %v208_v47, %s304_s10 }
  0x1d   :  { %v180_v45 = vsel %vm162_vm0, %v178_v43, %v176_v42  ;;  %v167_v46 = vld [vmem:[#allocation0 + $0x40] ss:$8 sm:$0xf]   ;;  %v228_v49 = vld [vmem:[#allocation0 + $0xc1] ss:$8 sm:$0xf0]  }
  0x1e   :  { %298 = vst.msk [vmem:[%s452_s1 + $0x10] sm:$0xff] %vm164_vm1, %v180_v45   ;;  %v169_v48 = vld [vmem:[#allocation0 + $0x40] ss:$8 sm:$0xf0]  }
  0x1f   :  { %v171_v50 = vsel %vm162_vm0, %v169_v48, %v167_v46  ;;  %v187_v51 = vld [vmem:[#allocation0 + $0xc0] ss:$8 sm:$0xf0]   ;;  %v226_v52 = vld [vmem:[#allocation0 + $0xc1] ss:$8 sm:$0xf]  }
  0x20   :  { %297 = vst.msk [vmem:[%s452_s1 + $0x8] sm:$0xff] %vm164_vm1, %v171_v50   ;;  %v185_v53 = vld [vmem:[#allocation0 + $0xc0] ss:$8 sm:$0xf]   ;;  %v230_v54 = vsel %vm162_vm0, %v228_v49, %v226_v52 }
  0x21   :  { %v189_v55 = vsel %vm162_vm0, %v187_v51, %v185_v53  ;;  %231 = vrot.lane.b32.xlu1 %v230_v54, %s304_s10 }
  0x22   :  { %299 = vst.msk [vmem:[%s452_s1 + $0x18] sm:$0xff] %vm164_vm1, %v189_v55  }
  0x87   :  { %v200_v56 = vpop.permute.xlu0 %199  }
  0x88   :  { %202 = vst.msk [vmem:[%s452_s1] sm:$0xff] %vm201_vm2, %v200_v56  }
  0x8c   :  { %v221_v57 = vpop.permute.xlu1 %220  }
  0x8d   :  { %301 = vst.msk [vmem:[%s452_s1 + $0x10] sm:$0xff] %vm201_vm2, %v221_v57  }
  0x8e   :  { %v210_v58 = vpop.permute.xlu0 %209  }
  0x8f   :  { %300 = vst.msk [vmem:[%s452_s1 + $0x8] sm:$0xff] %vm201_vm2, %v210_v58  }
  0x93   :  { %v232_v59 = vpop.permute.xlu1 %231  }
  0x94   :  { %302 = vst.msk [vmem:[%s452_s1 + $0x18] sm:$0xff] %vm201_vm2, %v232_v59  }

</bundles_post_ra>
